<compile_context>
chip_gen: v7x
topology: tpu7x:2x2x1
jax: 0.10.0
libtpu: 0.0.40
codegen_flags: <defaults>
</compile_context>

<pallas_src>
import functools

import jax
import jax.numpy as jnp
from jax import lax
from jax.experimental import pallas as pl
from jax.experimental.pallas import tpu as pltpu


def critic_kernel(x_ref, w1_ref, b1_ref, w2_ref, b2_ref, w3_ref, b3_ref,
                  o_ref, *, compute_dtype):
    # Layer 1: single K = NI+NA MXU dot (concat already done in the wrapper).
    x = x_ref[...].astype(compute_dtype)
    h1 = jnp.dot(x, w1_ref[...].astype(compute_dtype),
                 preferred_element_type=jnp.float32)
    h1 = jnp.maximum(h1 + b1_ref[...], 0.0)          # bias + ReLU in f32 (VPU)

    # Layer 2: Linear + ReLU.
    h2 = jnp.dot(h1.astype(compute_dtype), w2_ref[...].astype(compute_dtype),
                 preferred_element_type=jnp.float32)
    h2 = jnp.maximum(h2 + b2_ref[...], 0.0)

    # Layer 3 (out_features == 1), lane-dense: contract H of the [1, H] weight
    # row against H of h2 -> [1, tb] row (batch on lanes).  One MXU pass and
    # full-width vector stores instead of a masked [tb, 1] column writeback.
    q = lax.dot_general(w3_ref[...].astype(compute_dtype),
                        h2.astype(compute_dtype),
                        dimension_numbers=(((1,), (1,)), ((), ())),
                        preferred_element_type=jnp.float32)
    q = q + b3_ref[...]                               # (1, 1) broadcast over lanes
    o_ref[...] = q.reshape(o_ref.shape).astype(o_ref.dtype)


def critic_forward(inputs, actions, params, *, block_b=2048,
                   compute_dtype=jnp.bfloat16):
    """inputs: [B, num_inputs], actions: [B, num_actions]. Returns [B, 1]."""
    w1, b1, w2, b2, w3_row, b3 = params
    B = inputs.shape[0]
    ni, na = inputs.shape[1], actions.shape[1]
    k_in = ni + na
    h = w1.shape[1]

    # Packed input: one [B, NI+NA] array -> one DMA stream, one K=NI+NA dot.
    # (f32 here; the bf16 cast happens in-kernel so the f32 (8,128) block
    # rules apply uniformly to the input tiling.)
    x = jnp.concatenate([inputs, actions], axis=1)

    # Batch tile: batches up to block_b run as one full-extent tile
    # (grid=(1,) — optimal on single-TC v5e/v6e); larger batches use block_b
    # rows per step, giving >= 2 "parallel" steps so v7x's second TensorCore
    # gets work.  tb is a multiple of 8 (f32 sublane); no wrapper-side pad —
    # the ragged last block is masked by Pallas and tail rows are discarded.
    if B <= block_b:
        tb = 8 * pl.cdiv(B, 8)
    else:
        tb = block_b
    num_tiles = pl.cdiv(B, tb)

    # Activation tile marches over batch; weights/biases use a constant
    # index_map so they are fetched once and stay VMEM-resident.
    res_spec = lambda r, c: pl.BlockSpec((r, c), lambda i: (0, 0))

    out = pl.pallas_call(
        functools.partial(critic_kernel, compute_dtype=compute_dtype),
        out_shape=jax.ShapeDtypeStruct((num_tiles, 1, tb), jnp.float32),
        grid=(num_tiles,),
        in_specs=[
            pl.BlockSpec((tb, k_in), lambda i: (i, 0)),   # x tile   [tb, NI+NA]
            res_spec(k_in, h),                            # W1       [NI+NA, H]
            res_spec(1, h),                               # b1       [1, H]
            res_spec(h, h),                               # W2       [H, H]
            res_spec(1, h),                               # b2       [1, H]
            res_spec(1, h),                               # W3 row   [1, H]
            res_spec(1, 1),                               # b3       [1, 1]
        ],
        # Lane-dense output: one [1, tb] row per grid step.
        out_specs=pl.BlockSpec((1, 1, tb), lambda i: (i, 0, 0)),
        compiler_params=pltpu.CompilerParams(
            dimension_semantics=("parallel",),            # shards across v7x TCs
            vmem_limit_bytes=32 << 20,                    # headroom on v5e
        ),
    )(x, w1, b1, w2, b2, w3_row, b3)

    # Row (i, 0, j) of the output slab is batch row i*tb + j.
    return out.reshape(num_tiles * tb, 1)[:B]


def init_params(key, num_inputs, num_actions, hidden):
    """Deterministic, PyTorch-nn.Linear-style uniform init (synthetic)."""
    def linear(key, fan_in, fan_out):
        kw, kb = jax.random.split(key)
        bound = 1.0 / jnp.sqrt(jnp.float32(fan_in))
        w = jax.random.uniform(kw, (fan_in, fan_out), jnp.float32, -bound, bound)
        b = jax.random.uniform(kb, (1, fan_out), jnp.float32, -bound, bound)
        return w, b

    k1, k2, k3 = jax.random.split(key, 3)
    w1, b1 = linear(k1, num_inputs + num_actions, hidden)
    w2, b2 = linear(k2, hidden, hidden)
    w3, b3 = linear(k3, hidden, 1)
    # Kernel-friendly packing: W3 stored as a [1, H] row (lane-dense final
    # layer).  Same math as the torch module.
    return (w1, b1, w2, b2, w3.T, b3)


def critic_reference(inputs, actions, params):
    """Plain-JAX f32 reference: identical math to the PyTorch module."""
    w1, b1, w2, b2, w3_row, b3 = params
    x = jnp.concatenate([inputs, actions], axis=1)
    hid = jnp.maximum(x @ w1 + b1, 0.0)
    hid = jnp.maximum(hid @ w2 + b2, 0.0)
    return hid @ w3_row.T + b3


if __name__ == "__main__":
    # HalfCheetah-style critic: num_inputs=17 (obs), num_actions=6, hidden=32.
    NUM_INPUTS, NUM_ACTIONS, HIDDEN = 17, 6, 32

    key = jax.random.PRNGKey(0)
    k_in, k_act, k_par = jax.random.split(key, 3)
    params = init_params(k_par, NUM_INPUTS, NUM_ACTIONS, HIDDEN)

    # 1) Small batch, exact-precision path (f32 matmuls) -> tight tolerance.
    B = 8
    inputs = jax.random.normal(k_in, (B, NUM_INPUTS), jnp.float32)
    actions = jax.random.normal(k_act, (B, NUM_ACTIONS), jnp.float32)
    q = critic_forward(inputs, actions, params, compute_dtype=jnp.float32)
    jax.block_until_ready(q)
    q_ref = critic_reference(inputs, actions, params)
    assert q.shape == (B, 1)
    assert jnp.allclose(q, q_ref, atol=1e-5, rtol=1e-5)

    # 2) Same batch, default bf16-matmul path -> loose tolerance.
    q_bf = critic_forward(inputs, actions, params)
    jax.block_until_ready(q_bf)
    assert jnp.allclose(q_bf, q_ref, atol=5e-2, rtol=5e-2)

    # 3) Training-size batch, single full-extent tile (B=600 -> tb=600, grid=(1,)).
    B2 = 600
    k2a, k2b = jax.random.split(jax.random.PRNGKey(1))
    inputs2 = jax.random.normal(k2a, (B2, NUM_INPUTS), jnp.float32)
    actions2 = jax.random.normal(k2b, (B2, NUM_ACTIONS), jnp.float32)
    q2 = critic_forward(inputs2, actions2, params)
    jax.block_until_ready(q2)
    q2_ref = critic_reference(inputs2, actions2, params)
    assert q2.shape == (B2, 1)
    assert jnp.allclose(q2, q2_ref, atol=5e-2, rtol=5e-2)

    # 4) Multi-tile + ragged last block path (B=2500 -> tb=2048, grid=(2,)),
    #    no wrapper-side pad; tail rows are discarded by the [:B] slice.
    B3 = 2500
    k3a, k3b = jax.random.split(jax.random.PRNGKey(2))
    inputs3 = jax.random.normal(k3a, (B3, NUM_INPUTS), jnp.float32)
    actions3 = jax.random.normal(k3b, (B3, NUM_ACTIONS), jnp.float32)
    q3 = critic_forward(inputs3, actions3, params)
    jax.block_until_ready(q3)
    q3_ref = critic_reference(inputs3, actions3, params)
    assert q3.shape == (B3, 1)
    assert jnp.allclose(q3, q3_ref, atol=5e-2, rtol=5e-2)

    print("KERNEL_OK")
</pallas_src>

<mosaic_0001>
module attributes {stable_mosaic.version = 11 : i64} {
  func.func @critic_kernel(%arg0: i32, %arg1: memref<8x23xf32, #tpu.memory_space<vmem>>, %arg2: memref<23x32xf32, #tpu.memory_space<vmem>>, %arg3: memref<1x32xf32, #tpu.memory_space<vmem>>, %arg4: memref<32x32xf32, #tpu.memory_space<vmem>>, %arg5: memref<1x32xf32, #tpu.memory_space<vmem>>, %arg6: memref<1x32xf32, #tpu.memory_space<vmem>>, %arg7: memref<1x1xf32, #tpu.memory_space<vmem>>, %arg8: memref<1x1x8xf32, #tpu.memory_space<vmem>>) attributes {dimension_semantics = [#tpu.dimension_semantics<parallel>], iteration_bounds = array<i64: 1>, scalar_prefetch = 0 : i64, scratch_operands = 0 : i64, tpu.core_type = #tpu.core_type<tc>, window_params = [{transform_indices = @transform_0, window_bounds = array<i64: 8, 23>}, {pipeline_mode = #tpu.pipeline_mode<synchronous>, transform_indices = @transform_1, window_bounds = array<i64: 23, 32>}, {pipeline_mode = #tpu.pipeline_mode<synchronous>, transform_indices = @transform_2, window_bounds = array<i64: 1, 32>}, {pipeline_mode = #tpu.pipeline_mode<synchronous>, transform_indices = @transform_3, window_bounds = array<i64: 32, 32>}, {pipeline_mode = #tpu.pipeline_mode<synchronous>, transform_indices = @transform_4, window_bounds = array<i64: 1, 32>}, {pipeline_mode = #tpu.pipeline_mode<synchronous>, transform_indices = @transform_5, window_bounds = array<i64: 1, 32>}, {pipeline_mode = #tpu.pipeline_mode<synchronous>, transform_indices = @transform_6, window_bounds = array<i64: 1, 1>}, {transform_indices = @transform_7, window_bounds = array<i64: 1, 1, 8>}]} {
    %c0 = arith.constant 0 : index
    %c0_0 = arith.constant 0 : index
    %0 = vector.load %arg1[%c0, %c0_0] : memref<8x23xf32, #tpu.memory_space<vmem>>, vector<8x23xf32>
    %c0_1 = arith.constant 0 : index
    %c0_2 = arith.constant 0 : index
    %1 = vector.load %arg2[%c0_1, %c0_2] : memref<23x32xf32, #tpu.memory_space<vmem>>, vector<23x32xf32>
    %cst = arith.constant dense<0.000000e+00> : vector<8x32xf32>
    %2 = tpu.matmul %0, %1, %cst {dimension_numbers = #tpu.dot_dimension_numbers<[1], [0], [0], [1], [0, 0, 1, 1], [], []>} : vector<8x23xf32>, vector<23x32xf32>, vector<8x32xf32> -> vector<8x32xf32>
    %c0_3 = arith.constant 0 : index
    %c0_4 = arith.constant 0 : index
    %3 = vector.load %arg3[%c0_3, %c0_4] : memref<1x32xf32, #tpu.memory_space<vmem>>, vector<1x32xf32>
    %4 = vector.broadcast %3 : vector<1x32xf32> to vector<8x32xf32>
    %5 = arith.addf %2, %4 : vector<8x32xf32>
    %cst_5 = arith.constant 0.000000e+00 : f32
    %6 = vector.broadcast %cst_5 : f32 to vector<8x32xf32>
    %7 = arith.maximumf %5, %6 : vector<8x32xf32>
    %c0_6 = arith.constant 0 : index
    %c0_7 = arith.constant 0 : index
    %8 = vector.load %arg4[%c0_6, %c0_7] : memref<32x32xf32, #tpu.memory_space<vmem>>, vector<32x32xf32>
    %cst_8 = arith.constant dense<0.000000e+00> : vector<8x32xf32>
    %9 = tpu.matmul %7, %8, %cst_8 {dimension_numbers = #tpu.dot_dimension_numbers<[1], [0], [0], [1], [0, 0, 1, 1], [], []>} : vector<8x32xf32>, vector<32x32xf32>, vector<8x32xf32> -> vector<8x32xf32>
    %c0_9 = arith.constant 0 : index
    %c0_10 = arith.constant 0 : index
    %10 = vector.load %arg5[%c0_9, %c0_10] : memref<1x32xf32, #tpu.memory_space<vmem>>, vector<1x32xf32>
    %11 = vector.broadcast %10 : vector<1x32xf32> to vector<8x32xf32>
    %12 = arith.addf %9, %11 : vector<8x32xf32>
    %cst_11 = arith.constant 0.000000e+00 : f32
    %13 = vector.broadcast %cst_11 : f32 to vector<8x32xf32>
    %14 = arith.maximumf %12, %13 : vector<8x32xf32>
    %c0_12 = arith.constant 0 : index
    %c0_13 = arith.constant 0 : index
    %15 = vector.load %arg6[%c0_12, %c0_13] : memref<1x32xf32, #tpu.memory_space<vmem>>, vector<1x32xf32>
    %cst_14 = arith.constant dense<0.000000e+00> : vector<1x8xf32>
    %16 = tpu.matmul %15, %14, %cst_14 {dimension_numbers = #tpu.dot_dimension_numbers<[1], [1], [0], [0], [0, 0, 1, 0], [], []>} : vector<1x32xf32>, vector<8x32xf32>, vector<1x8xf32> -> vector<1x8xf32>
    %c0_15 = arith.constant 0 : index
    %c0_16 = arith.constant 0 : index
    %17 = vector.load %arg7[%c0_15, %c0_16] : memref<1x1xf32, #tpu.memory_space<vmem>>, vector<1x1xf32>
    %18 = vector.broadcast %17 : vector<1x1xf32> to vector<1x8xf32>
    %19 = arith.addf %16, %18 : vector<1x8xf32>
    %20 = vector.shape_cast %19 : vector<1x8xf32> to vector<1x1x8xf32>
    %c0_17 = arith.constant 0 : index
    %c0_18 = arith.constant 0 : index
    %c0_19 = arith.constant 0 : index
    %21 = vector.load %arg8[%c0_17, %c0_18, %c0_19] : memref<1x1x8xf32, #tpu.memory_space<vmem>>, vector<1x1x8xf32>
    tpu.vector_store %arg8[%c0_17, %c0_18, %c0_19], %20 {strides = array<i32>} : memref<1x1x8xf32, #tpu.memory_space<vmem>>, vector<1x1x8xf32>,
    return
  }
  func.func @transform_0(%arg0: i32) -> (i32, i32) {
    %c0_i32 = arith.constant 0 : i32
    %c0_i32_0 = arith.constant 0 : i32
    return %arg0, %c0_i32 : i32, i32
  }
  func.func @transform_1(%arg0: i32) -> (i32, i32) {
    %c0_i32 = arith.constant 0 : i32
    %c0_i32_0 = arith.constant 0 : i32
    %c0_i32_1 = arith.constant 0 : i32
    return %c0_i32, %c0_i32_0 : i32, i32
  }
  func.func @transform_2(%arg0: i32) -> (i32, i32) {
    %c0_i32 = arith.constant 0 : i32
    %c0_i32_0 = arith.constant 0 : i32
    %c0_i32_1 = arith.constant 0 : i32
    return %c0_i32, %c0_i32_0 : i32, i32
  }
  func.func @transform_3(%arg0: i32) -> (i32, i32) {
    %c0_i32 = arith.constant 0 : i32
    %c0_i32_0 = arith.constant 0 : i32
    %c0_i32_1 = arith.constant 0 : i32
    return %c0_i32, %c0_i32_0 : i32, i32
  }
  func.func @transform_4(%arg0: i32) -> (i32, i32) {
    %c0_i32 = arith.constant 0 : i32
    %c0_i32_0 = arith.constant 0 : i32
    %c0_i32_1 = arith.constant 0 : i32
    return %c0_i32, %c0_i32_0 : i32, i32
  }
  func.func @transform_5(%arg0: i32) -> (i32, i32) {
    %c0_i32 = arith.constant 0 : i32
    %c0_i32_0 = arith.constant 0 : i32
    %c0_i32_1 = arith.constant 0 : i32
    return %c0_i32, %c0_i32_0 : i32, i32
  }
  func.func @transform_6(%arg0: i32) -> (i32, i32) {
    %c0_i32 = arith.constant 0 : i32
    %c0_i32_0 = arith.constant 0 : i32
    %c0_i32_1 = arith.constant 0 : i32
    return %c0_i32, %c0_i32_0 : i32, i32
  }
  func.func @transform_7(%arg0: i32) -> (i32, i32, i32) {
    %c0_i32 = arith.constant 0 : i32
    %c0_i32_0 = arith.constant 0 : i32
    %c0_i32_1 = arith.constant 0 : i32
    return %arg0, %c0_i32, %c0_i32_0 : i32, i32, i32
  }
}

</mosaic_0001>

<bundles_post_ra>
// kernel: tpu_custom_call.1
= control target key start
LH: loop header
LB: loop body
LE: loop exit
PB: predicated region body
PF: predicated region fallthrough
CT: control target
= control target key end

     0   :  { %s625_s0 = inlined_call_operand.hbm [shape: f32[8,23], index: 0, kind: input, shape index: {}]   ;;  %s626_s1 = inlined_call_operand.hbm [shape: f32[23,32], index: 1, kind: input, shape index: {}]   ;;  %s627_s2 = inlined_call_operand.vmem [shape: f32[1,32], index: 2, kind: input, shape index: {}]   ;;  %s628_s3 = inlined_call_operand.hbm [shape: f32[32,32], index: 3, kind: input, shape index: {}]   ;;  %s629_s4 = inlined_call_operand.vmem [shape: f32[1,32], index: 4, kind: input, shape index: {}]   ;;  %s630_s5 = inlined_call_operand.vmem [shape: f32[1,32], index: 5, kind: input, shape index: {}]   ;;  %s631_s6 = inlined_call_operand.<no memory space> [shape: f32[1,1], index: 6, kind: input, shape index: {}]   ;;  %s632_s7 = inlined_call_operand.hbm [shape: f32[1,1,8], index: 7, kind: output, shape index: {}]  }
   0x1   :  { %v12_v0 = vstv %s631_s6 }
   0x2   :  { %13 = vst [vmem:[#allocation2] sm:$0x1] %v12_v0 }
   0x3   :  { %14 = vsyncpa [#allocation4], 0 }
   0x4   :  { %15 = vsyncpa [#allocation7], 0 }
   0x5   :  { %16 = vsyncpa [#allocation5], 0  ;;  %s506_s26 = smov [#allocation6]   ;;  %s412_s30 = scalar_lea.hbm %s626_s1, 384 }
   0x6   :  { %s32_s27 = sshll.u32 %s506_s26, 4  ;;  %p413_p0 = scmp.ne.s32.totalorder %s626_s1, %s412_s30  ;;  %s33_s27 = int_to_ptr.vmem [resolvable:$true] %s32_s27 }
   0x7   :  { %p416_p1 = scmp.lt.u32.totalorder %s412_s30, %s626_s1 }
   0x9   :  { %p418_p2 = pnand %p416_p1, %p413_p0 }
   0xb   :  { %421 = shalt.err (!%p418_p2)
}
   0xc   :  { %s422_s6 = scalar_lea.vmem %s33_s27, 384  ;;  %p427_p4 = scmp.lt.s32.totalorder %s33_s27, %s33_s27 }
   0xd   :  { %p423_p3 = scmp.ne.s32.totalorder %s33_s27, %s422_s6  ;;  %p428_p5 = scmp.lt.s32.totalorder %s422_s6, %s422_s6 }
   0xf   :  { %p429_p6 = por %p428_p5, %p427_p4 }
  0x11   :  { %p430_p7 = pnand %p429_p6, %p423_p3 }
  0x13   :  { %433 = shalt.err (!%p430_p7)
}
  0x14   :  { %s507_s12 = smov 128   ;;  %s508_s13 = smov 8  }
  0x15   :  { %38 = dma.hbm_to_vmem [thread:$0]  %s626_s1, 384, %s33_s27, [#allocation7], %s507_s12, %s507_s12, %s508_s13  }
  0x16   :  { %s509_s16 = smov [#allocation3]   ;;  %s510_s18 = smov [#allocation8]  }
  0x17   :  { %s23_s17 = sshll.u32 %s509_s16, 4  ;;  %s46_s19 = sshll.u32 %s510_s18, 4  ;;  %s24_s17 = int_to_ptr.vmem [resolvable:$true] %s23_s17  ;;  %s47_s19 = int_to_ptr.vmem [resolvable:$true] %s46_s19 }
  0x18   :  { %s434_s22 = scalar_lea.hbm %s625_s0, 128 }
  0x19   :  { %p435_p8 = scmp.ne.s32.totalorder %s625_s0, %s434_s22  ;;  %p438_p9 = scmp.lt.u32.totalorder %s434_s22, %s625_s0 }
  0x1b   :  { %p440_p10 = pnand %p438_p9, %p435_p8 }
  0x1d   :  { %443 = shalt.err (!%p440_p10)
}
  0x1e   :  { %s444_s1 = scalar_lea.vmem %s24_s17, 128  ;;  %p449_p12 = scmp.lt.s32.totalorder %s24_s17, %s24_s17 }
  0x1f   :  { %p445_p11 = scmp.ne.s32.totalorder %s24_s17, %s444_s1  ;;  %p450_p13 = scmp.lt.s32.totalorder %s444_s1, %s444_s1 }
  0x21   :  { %p451_p0 = por %p450_p13, %p449_p12 }
  0x23   :  { %p452_p1 = pnand %p451_p0, %p445_p11 }
  0x25   :  { %455 = shalt.err (!%p452_p1)
}
  0x26   :  { %26 = dma.hbm_to_vmem [thread:$0]  %s625_s0, 128, %s24_s17, [#allocation4]  }
  0x27   :  { %s456_s8 = scalar_lea.hbm %s628_s3, 512 }
  0x28   :  { %p457_p2 = scmp.ne.s32.totalorder %s628_s3, %s456_s8  ;;  %p460_p3 = scmp.lt.u32.totalorder %s456_s8, %s628_s3 }
  0x2a   :  { %p462_p4 = pnand %p460_p3, %p457_p2 }
  0x2c   :  { %465 = shalt.err (!%p462_p4)
}
  0x2d   :  { %s466_s14 = scalar_lea.vmem %s47_s19, 512  ;;  %p471_p6 = scmp.lt.s32.totalorder %s47_s19, %s47_s19 }
  0x2e   :  { %p467_p5 = scmp.ne.s32.totalorder %s47_s19, %s466_s14  ;;  %p472_p7 = scmp.lt.s32.totalorder %s466_s14, %s466_s14 }
  0x30   :  { %p473_p8 = por %p472_p7, %p471_p6 }
  0x32   :  { %p474_p9 = pnand %p473_p8, %p467_p5 }
  0x34   :  { %477 = shalt.err (!%p474_p9)
}
  0x35   :  { %52 = dma.hbm_to_vmem [thread:$0]  %s628_s3, 512, %s47_s19, [#allocation7], %s507_s12, %s507_s12, %s508_s13  }
  0x36   :  { %500 = dma.done.wait [#allocation4], 128  }
  0x37   :  { %501 = vsyncadd [#allocation4], 4294967168 }
  0x38   :  { %502 = dma.done.wait [#allocation7], 896  }
  0x39   :  { %503 = vsyncadd [#allocation7], 4294966400  ;;  %v511_v1 = vmov 0.0|0.0   ;;  %vm512_vm0 = vmmov 0   ;;  %v513_v2 = vmov 0.0   ;;  %v69_v3 = vld [vmem:[#allocation6] sm:$0xff]  ;;  %v251_v27 = vlaneseq }
  0x3a   :  { %392 = vmatprep.subr.bf16.mxu0 %v511_v1  ;;  %373 = vmatprep.mubr.msk.f32.mxu0 %vm512_vm0, %v513_v2  ;;  %v70_v4 = vld [vmem:[#allocation6 + $0x8] sm:$0xff]  ;;  %v158_v6 = vld [vmem:[#allocation8] sm:$0xff]  ;;  %v159_v7 = vld [vmem:[#allocation8 + $0x8] sm:$0xff]  ;;  %vm83_vm1 = vcmask 1046528   ;;  %vm79_vm2 = vcmask 187392   ;;  %vm169_vm3 = vcmask 261120  }
  0x3b   :  { %395 = vmatprep.subr.bf16.mxu1 %v511_v1  ;;  %384 = vmatprep.mubr.msk.f32.mxu1 %vm512_vm0, %v513_v2  ;;  %v393_v5 = vpack.c.bf16 %v70_v4, %v69_v3  ;;  %v396_v8 = vpack.c.bf16 %v159_v7, %v158_v6  ;;  %v71_v9 = vld [vmem:[#allocation6 + $0x10] sm:$0x7f]  ;;  %v68_v10 = vld [vmem:[#allocation3] sm:$0xff]  ;;  %v160_v11 = vld [vmem:[#allocation8 + $0x10] sm:$0xff]  ;;  %v514_v20 = vmov 0   ;;  %v252_v28 = vshrl.u32 %v251_v27, 7 }
  0x3c   :  { %v161_v12 = vld [vmem:[#allocation8 + $0x18] sm:$0xff]  ;;  %411 = vset.pattern.permute.xlu0 %v514_v20  ;;  %s515_s18 = smov [#allocation9]   ;;  %vm331_vm4 = vcmask 57344  }
  0x3d   :  { %394 = vmatpush3.bf16.msra.mxu0 %v393_v5  ;;  %397 = vmatpush3.bf16.msra.mxu1 %v396_v8  ;;  %v399_v13 = vpack.c.bf16 %v161_v12, %v160_v11  ;;  %v349_v14 = vld [vmem:[%s627_s2] ss:$0 sm:$0xff]  ;;  %v253_v29 = vsub.s32 0, %v252_v28  ;;  %s339_s19 = sshll.u32 %s515_s18, 4  ;;  %s340_s19 = int_to_ptr.vmem [resolvable:$true] %s339_s19 }
  0x3e   :  { %371 = vmatprep.subr.mxu0 %v513_v2  ;;  %398 = vmatprep.subr.bf16.mxu1 %v511_v1  ;;  %v245_v19 = vld [vmem:[#allocation2] sm:$0x1]  ;;  %s482_s20 = scalar_lea.vmem %s340_s19, 32  ;;  %p483_p11 = scmp.lt.s32.totalorder %s340_s19, %s340_s19 }
  0x3f   :  { %248 = vperm.xlu0 %411, %v245_v19   ;;  %v352_v21 = vld [vmem:[%s629_s4] ss:$0 sm:$0xff]  ;;  %s478_s4 = scalar_lea.vmem %s340_s19, 16 }
  0x40   :  { %v244_v26 = vld [vmem:[%s630_s5] sm:$0x1]  ;;  %p479_p10 = scmp.ne.s32.totalorder %s340_s19, %s478_s4  ;;  %p484_p12 = scmp.lt.s32.totalorder %s482_s20, %s478_s4 }
  0x41   :  { %372 = vmatpush3.msk.msra.mxu0 %vm83_vm1, %v71_v9  ;;  %400 = vmatpush3.bf16.msra.mxu1 %v399_v13 }
  0x42   :  { %374 = vmatmul.mubr.msk.f32.vlgmr.msra.gmra.mrb[0].mxu0 %vm79_vm2, %v68_v10  ;;  %387 = vmatprep.subr.mxu0 %v513_v2  ;;  %p485_p13 = por %p484_p12, %p483_p11 }
  0x43   :  { %389 = vmatprep.mubr.msk.f32.mxu0 %vm512_vm0, %v513_v2 }
  0x44   :  { %p486_p0 = pnand %p485_p13, %p479_p10 }
  0xbe   :  { %v249_v30 = vpop.permute.xlu0 %248 }
  0xbf   :  { %v254_v31 = vrot.slane %v249_v30, %v253_v29 }
 0x115   :  { %v153_v15 = vpop.f32.mrb[0].mxu0 }
 0x116   :  { %v154_v16 = vadd.f32 %v349_v14, %v153_v15  ;;  %v375_v17 = vpop.f32.mrb[1].mxu0 }
 0x118   :  { %v157_v18 = vmax.f32 %v154_v16, 0.0 }
 0x11a   :  { %385 = vmatmul.mubr.msk.f32.vlgmr.msra.gmra.mrb[0].mxu1 %vm169_vm3, %v157_v18 }
 0x1ed   :  { %v239_v22 = vpop.f32.mrb[0].mxu1 }
 0x1ee   :  { %v240_v23 = vadd.f32 %v352_v21, %v239_v22  ;;  %v386_v24 = vpop.f32.mrb[1].mxu1 }
 0x1f0   :  { %v243_v25 = vmax.f32 %v240_v23, 0.0 }
 0x1f2   :  { %388 = vmatpush3.xpose.msk.msra.mxu0 %vm169_vm3, %v243_v25 }
 0x1f5   :  { %390 = vmatmul.mubr.msk.f32.vlgmr.msra.gmra.mrb[2].mxu0 %vm169_vm3, %v244_v26 }
 0x2c8   :  { %v327_v32 = vpop.f32.mrb[2].mxu0 }
 0x2c9   :  { %v328_v33 = vadd.f32 %v327_v32, %v254_v31  ;;  %v391_v34 = vpop.f32.mrb[3].mxu0 }
 0x2cb   :  { %332 = vst.msk [vmem:[#allocation9] sm:$0x1] %vm331_vm4, %v328_v33 }
 0x2cc   :  { %489 = shalt.err (!%p486_p0)
}
 0x2cd   :  { %s490_s22 = scalar_lea.hbm %s632_s7, 16 }
 0x2ce   :  { %p491_p1 = scmp.ne.s32.totalorder %s632_s7, %s490_s22  ;;  %p494_p2 = scmp.lt.u32.totalorder %s490_s22, %s632_s7 }
 0x2d0   :  { %p496_p3 = pnand %p494_p2, %p491_p1 }
 0x2d2   :  { %499 = shalt.err (!%p496_p3)
}
 0x2d3   :  { %342 = dma.vmem_to_hbm [thread:$0]  %s340_s19, 16, %s632_s7, [#allocation5]  }
 0x2d4   :  { %504 = dma.done.wait [#allocation5], 16  }
 0x2d5   :  { %505 = vsyncadd [#allocation5], 4294967280 }
 0x2d6   :  { %346 = vsyncpa [#allocation4], 1 }
 0x2d7   :  { %347 = vsyncpa [#allocation7], 1 }
 0x2d8   :  { %348 = vsyncpa [#allocation5], 1 }

</bundles_post_ra>
